<compile_context>
chip_gen: v5e
topology: v5e:2x2
jax: 0.10.0
libtpu: 0.0.40
codegen_flags: <defaults>
</compile_context>

<pallas_src>
import jax
import jax.numpy as jnp
from jax.experimental import pallas as pl
from jax.experimental.pallas import tpu as pltpu


def _trelu_kernel(ab_ref, x_ref, o_ref):
    # ab_ref: (TM, 1)  per-row |bias| column (VMEM), broadcasts over lanes.
    # x_ref / o_ref: (TM, TN) lane-dense tiles (VMEM).
    ab = ab_ref[...]
    x = x_ref[...]
    # NaN-propagating hard threshold (matches the PyTorch formula on NaN).
    o_ref[...] = jnp.where(x <= ab, jnp.zeros_like(x), x)


def _round_up(v, m):
    return -(-v // m) * m


def _device_profile():
    """Per-generation VMEM tile budget (bytes), vmem limit, and megacore flag."""
    try:
        kind = jax.devices()[0].device_kind.lower()
    except Exception:
        kind = ""
    if "v7" in kind or "tpu7" in kind:
        # 64 MiB physical VMEM, 3.2 TB/s HBM, 2 TensorCores per chip.
        return {"budget": 4 << 20, "vmem_limit": 40 << 20, "two_cores": True}
    if "v6" in kind:
        # 4 MiB/buffer fits the 32 MiB default scoped VMEM with no flags.
        return {"budget": 4 << 20, "vmem_limit": None, "two_cores": False}
    # v5e / unknown: 2 MiB/buffer keeps in+out double-buffered within the
    # 16 MiB default scoped VMEM; larger tiles buy ~nothing at 0.82 TB/s.
    return {"budget": 2 << 20, "vmem_limit": None, "two_cores": False}


def _choose_tiles(rows, cols, itemsize, budget_bytes, want_two_steps):
    """Pick (TM, TN): sublane/lane aligned, per-buffer bytes <= budget."""
    sub = {1: 32, 2: 16}.get(itemsize, 8)   # dtype-dependent sublane alignment
    lane = 128
    rows_p = _round_up(rows, sub)
    cols_p = _round_up(cols, lane)

    budget_elems = max(sub * lane, budget_bytes // itemsize)
    # Prefer lane-dense tiles: take the full (padded) width if it fits with
    # at least `sub` rows, then spend the rest of the budget on rows.
    tn = min(cols_p, max(lane, (budget_elems // sub) // lane * lane))
    tm = min(rows_p, max(sub, (budget_elems // tn) // sub * sub))

    # On 2-TC chips make sure there are >= 2 grid steps to shard across cores.
    if want_two_steps and pl.cdiv(rows, tm) * pl.cdiv(cols, tn) < 2:
        if rows > sub:
            tm = _round_up(pl.cdiv(rows, 2), sub)
        elif cols > lane:
            tn = _round_up(pl.cdiv(cols, 2), lane)
    return tm, tn


def trelu_with_trainable_bias(x, bias):
    """x: (N, C, H, W);  bias: (1, C, 1, 1)  ->  (N, C, H, W)."""
    N, C, H, W = x.shape
    rows, cols = N * C, H * W

    # Lane-dense 2D view of the input and a per-row |bias| column (tiny).
    # TODO(synk): if the surrounding model is channels-last or H*W < 128, a
    # (N*H*W, C)-major slab with a (1, C) bias row keeps lanes denser.
    x2 = x.reshape(rows, cols)
    ab = jnp.abs(bias).astype(x.dtype).reshape(1, C)
    ab = jnp.broadcast_to(ab, (N, C)).reshape(rows, 1)

    prof = _device_profile()
    itemsize = jnp.dtype(x.dtype).itemsize
    TM, TN = _choose_tiles(rows, cols, itemsize, prof["budget"], prof["two_cores"])

    # Ragged-edge grid: no input padding, no output slicing. Pallas masks the
    # partial edge blocks; pad-region garbage never reaches valid outputs
    # because the op is elementwise.
    grid = (pl.cdiv(rows, TM), pl.cdiv(cols, TN))

    cp_kwargs = {"dimension_semantics": ("parallel", "parallel")}
    if prof["vmem_limit"] is not None:
        cp_kwargs["vmem_limit_bytes"] = prof["vmem_limit"]

    out = pl.pallas_call(
        _trelu_kernel,
        out_shape=jax.ShapeDtypeStruct((rows, cols), x.dtype),
        grid_spec=pltpu.PrefetchScalarGridSpec(
            num_scalar_prefetch=0,
            grid=grid,
            in_specs=[
                # |bias| column: block index constant across the inner (j) loop.
                pl.BlockSpec((TM, 1), lambda i, j: (i, 0)),
                pl.BlockSpec((TM, TN), lambda i, j: (i, j)),
            ],
            out_specs=pl.BlockSpec((TM, TN), lambda i, j: (i, j)),
        ),
        compiler_params=pltpu.CompilerParams(**cp_kwargs),
    )(ab, x2)

    return out.reshape(N, C, H, W)


if __name__ == "__main__":
    key = jax.random.PRNGKey(0)
    kx, kb = jax.random.split(key)

    N, C, H, W = 2, 4, 16, 16
    x = jax.random.normal(kx, (N, C, H, W), dtype=jnp.float32)
    # Module __init__: bias = randn((1, C, 1, 1)) / 50.0
    bias = jax.random.normal(kb, (1, C, 1, 1), dtype=jnp.float32) / 50.0

    y = trelu_with_trainable_bias(x, bias)
    y = jax.block_until_ready(y)

    # Pure-JAX reference check of the exact PyTorch formula.
    ab = jnp.abs(bias)
    r = jnp.maximum(x - ab, 0.0)
    y_ref = r + ab * jnp.sign(r)
    assert y.shape == x.shape
    assert jnp.allclose(y, y_ref, atol=1e-6), "mismatch vs reference"

    print("KERNEL_OK")
</pallas_src>

<mosaic_0001>
module attributes {stable_mosaic.version = 11 : i64} {
  func.func @_trelu_kernel(%arg0: i32, %arg1: i32, %arg2: memref<8x1xf32, #tpu.memory_space<vmem>>, %arg3: memref<8x256xf32, #tpu.memory_space<vmem>>, %arg4: memref<8x256xf32, #tpu.memory_space<vmem>>) attributes {dimension_semantics = [#tpu.dimension_semantics<parallel>, #tpu.dimension_semantics<parallel>], iteration_bounds = array<i64: 1, 1>, scalar_prefetch = 0 : i64, scratch_operands = 0 : i64, tpu.core_type = #tpu.core_type<tc>, window_params = [{transform_indices = @transform_0, window_bounds = array<i64: 8, 1>}, {transform_indices = @transform_1, window_bounds = array<i64: 8, 256>}, {transform_indices = @transform_2, window_bounds = array<i64: 8, 256>}]} {
    %c0 = arith.constant 0 : index
    %c0_0 = arith.constant 0 : index
    %0 = vector.load %arg2[%c0, %c0_0] : memref<8x1xf32, #tpu.memory_space<vmem>>, vector<8x1xf32>
    %c0_1 = arith.constant 0 : index
    %c0_2 = arith.constant 0 : index
    %1 = vector.load %arg3[%c0_1, %c0_2] : memref<8x256xf32, #tpu.memory_space<vmem>>, vector<8x256xf32>
    %2 = vector.broadcast %0 : vector<8x1xf32> to vector<8x256xf32>
    %3 = arith.cmpf ole, %1, %2 : vector<8x256xf32>
    %cst = arith.constant 0.000000e+00 : f32
    %4 = vector.broadcast %cst : f32 to vector<8x256xf32>
    %5 = arith.select %3, %4, %1 : vector<8x256xi1>, vector<8x256xf32>
    %c0_3 = arith.constant 0 : index
    %c0_4 = arith.constant 0 : index
    %6 = vector.load %arg4[%c0_3, %c0_4] : memref<8x256xf32, #tpu.memory_space<vmem>>, vector<8x256xf32>
    tpu.vector_store %arg4[%c0_3, %c0_4], %5 {strides = array<i32>} : memref<8x256xf32, #tpu.memory_space<vmem>>, vector<8x256xf32>,
    return
  }
  func.func @transform_0(%arg0: i32, %arg1: i32) -> (i32, i32) {
    %c0_i32 = arith.constant 0 : i32
    %c0_i32_0 = arith.constant 0 : i32
    return %arg0, %c0_i32 : i32, i32
  }
  func.func @transform_1(%arg0: i32, %arg1: i32) -> (i32, i32) {
    %c0_i32 = arith.constant 0 : i32
    return %arg0, %arg1 : i32, i32
  }
  func.func @transform_2(%arg0: i32, %arg1: i32) -> (i32, i32) {
    %c0_i32 = arith.constant 0 : i32
    return %arg0, %arg1 : i32, i32
  }
}

</mosaic_0001>

<bundles_post_ra>
// kernel: tpu_custom_call.1
= control target key start
LH: loop header
LB: loop body
LE: loop exit
PB: predicated region body
PF: predicated region fallthrough
CT: control target
= control target key end

     0   :  { %7 = vsyncpa [#allocation3], 0  ;;  %s140_s0 = inlined_call_operand.vmem [shape: f32[8,1], index: 0, kind: input, shape index: {}]   ;;  %s141_s1 = inlined_call_operand.hbm [shape: f32[8,256], index: 1, kind: input, shape index: {}]   ;;  %s142_s2 = inlined_call_operand.hbm [shape: f32[8,256], index: 2, kind: output, shape index: {}]  }
   0x1   :  { %8 = vsyncpa [#allocation4], 0  ;;  %s16_s11 = sshll.u32 %s141_s1, 4  ;;  %s113_s12 = smov [#allocation2]   ;;  %s17_s11 = int_to_ptr.hbm [resolvable:$true] %s16_s11 }
   0x2   :  { %s18_s13 = sshll.u32 %s113_s12, 4  ;;  %s19_s13 = int_to_ptr.vmem [resolvable:$true] %s18_s13 }
   0x3   :  { %21 = dma.hbm_to_vmem [thread:$0]  %s17_s11, 256, %s19_s13, [#allocation3]  }
   0x4   :  { %109 = dma.done.wait [#allocation3], 256  }
   0x5   :  { %110 = vsyncadd [#allocation3], 4294967040  ;;  %v114_v0 = vmov 0   ;;  %v26_v1 = vld [vmem:[%s140_s0] sm:$0xff]  ;;  %v28_v3 = vld [vmem:[#allocation2 + $0x8] sm:$0xff]  ;;  %s115_s16 = smov [#allocation5]  }
   0x6   :  { %60 = vset.pattern.permute.xlu0 %v114_v0  ;;  %v27_v2 = vld [vmem:[#allocation2] sm:$0xff]  ;;  %s45_s17 = sshll.u32 %s115_s16, 4  ;;  %s47_s19 = sshll.u32 %s142_s2, 4  ;;  %s46_s17 = int_to_ptr.vmem [resolvable:$true] %s45_s17  ;;  %s48_s19 = int_to_ptr.hbm [resolvable:$true] %s47_s19 }
   0x7   :  { %31 = vperm.xlu0 %60, %v26_v1  }
  0x79   :  { %v32_v4 = vpop.permute.xlu0 %31 }
  0x7a   :  { %vm34_vm0 = vcmp.le.f32.partialorder %v27_v2, %v32_v4  ;;  %vm35_vm1 = vcmp.le.f32.partialorder %v28_v3, %v32_v4 }
  0x7b   :  { %v36_v5 = vsel %vm34_vm0, 0.0, %v27_v2  ;;  %v37_v6 = vsel %vm35_vm1, 0.0, %v28_v3 }
  0x7c   :  { %38 = vst [vmem:[#allocation5] sm:$0xff] %v36_v5 }
  0x7d   :  { %39 = vst [vmem:[#allocation5 + $0x8] sm:$0xff] %v37_v6 }
  0x7e   :  { %50 = dma.vmem_to_hbm [thread:$0]  %s46_s17, 256, %s48_s19, [#allocation4]  }
  0x7f   :  { %111 = dma.done.wait [#allocation4], 256  }
  0x80   :  { %112 = vsyncadd [#allocation4], 4294967040 }
  0x81   :  { %55 = vsyncpa [#allocation3], 1 }
  0x82   :  { %56 = vsyncpa [#allocation4], 1 }

</bundles_post_ra>
